<compile_context>
chip_gen: v5e
topology: v5e:2x2
jax: 0.10.0
libtpu: 0.0.40
codegen_flags: <defaults>
</compile_context>

<pallas_src>
import jax
import jax.numpy as jnp
from jax.experimental import pallas as pl
from jax.experimental.pallas import tpu as pltpu


_VMEM_LIMIT = 32 * 1024 * 1024  # safe on v5e/v6e (128 MiB) and v7x (64 MiB)


# --------------------------- conv1x1 (tiled matmul) --------------------------

def _matmul_bias_kernel(x_ref, w_ref, b_ref, o_ref):
    # x: (tm, Cin), w: (Cin, Cout) bf16, b: (1, Cout) f32
    acc = jnp.dot(x_ref[...].astype(jnp.bfloat16), w_ref[...],
                  preferred_element_type=jnp.float32)
    o_ref[...] = (acc + b_ref[...]).astype(o_ref.dtype)


def conv1x1(x, w_bf16, b, out_dtype=jnp.float32, tile_m=512):
    """1x1 conv (stride 1): x (B,H,W,Cin) @ w (Cin,Cout) + b."""
    B, H, W, Cin = x.shape
    Cout = w_bf16.shape[1]
    M = B * H * W
    xm = x.reshape(M, Cin)
    tm = M if M <= tile_m else tile_m            # tile_m is a multiple of 8
    out = pl.pallas_call(
        _matmul_bias_kernel,
        grid=(pl.cdiv(M, tm),),
        in_specs=[
            pl.BlockSpec((tm, Cin), lambda i: (i, 0)),
            pl.BlockSpec((Cin, Cout), lambda i: (0, 0)),
            pl.BlockSpec((1, Cout), lambda i: (0, 0)),
        ],
        out_specs=pl.BlockSpec((tm, Cout), lambda i: (i, 0)),
        out_shape=jax.ShapeDtypeStruct((M, Cout), out_dtype),
        compiler_params=pltpu.CompilerParams(
            dimension_semantics=("parallel",),
            vmem_limit_bytes=_VMEM_LIMIT),
    )(xm, w_bf16, b.reshape(1, Cout))
    return out.reshape(B, H, W, Cout)


# ---------------- shared 3x3 SAME-conv body (runs inside the FPN kernels) ----

def _conv3x3_body(pre, w2_ref, b2_ref, out_ref, xpad_ref):
    # pre: (H, W, C) f32 value already resident in vregs;
    # w2: (9*C, Cout) bf16, b2: (1, Cout) f32, xpad scratch: (H+2, W+2, C) bf16.
    H, W, C = pre.shape
    Cout = out_ref.shape[3]
    # Zero pad into VMEM scratch (SAME pad = 1 px each side for k=3, s=1).
    xpad_ref[...] = jnp.zeros_like(xpad_ref)
    xpad_ref[1:H + 1, 1:W + 1, :] = pre.astype(xpad_ref.dtype)
    xp = xpad_ref[...]
    # im2col: one deep K = 9*C matmul instead of 9 shallow K = C matmuls.
    cols = jnp.concatenate(
        [xp[dy:dy + H, dx:dx + W, :] for dy in range(3) for dx in range(3)],
        axis=-1).reshape(H * W, 9 * C)
    acc = jnp.dot(cols, w2_ref[...], preferred_element_type=jnp.float32)
    out_ref[...] = (acc + b2_ref[...]).reshape(1, H, W, Cout).astype(out_ref.dtype)


# ------------- fused P5 head: conv1x1 + SamePad(3,1)+conv3x3 -----------------

def _top_level_kernel(c_ref, w1_ref, b1_ref, w2_ref, b2_ref,
                      pre_ref, out_ref, xpad_ref):
    _, H, W, Cout = out_ref.shape
    Cin = c_ref.shape[3]
    lhs = c_ref[0].astype(jnp.bfloat16).reshape(H * W, Cin)
    lat = jnp.dot(lhs, w1_ref[...], preferred_element_type=jnp.float32) + b1_ref[...]
    pre = lat.reshape(H, W, Cout)
    pre_ref[...] = pre.reshape(1, H, W, Cout)
    _conv3x3_body(pre, w2_ref, b2_ref, out_ref, xpad_ref)


# ---- fused lateral head: conv1x1 + upsample2(coarse)+add + conv3x3 ----------

def _lateral_level_kernel(c_ref, p_ref, w1_ref, b1_ref, w2_ref, b2_ref,
                          pre_ref, out_ref, xpad_ref):
    _, H, W, Cout = out_ref.shape
    Cin = c_ref.shape[3]
    lhs = c_ref[0].astype(jnp.bfloat16).reshape(H * W, Cin)
    lat = jnp.dot(lhs, w1_ref[...], preferred_element_type=jnp.float32) + b1_ref[...]
    up = p_ref[0]                                   # (H//2, W//2, Cout) f32
    up = jnp.repeat(up, 2, axis=0)                  # (H,    W//2, Cout)
    up = jnp.repeat(up, 2, axis=1)                  # (H,    W,    Cout)
    pre = lat.reshape(H, W, Cout) + up
    pre_ref[...] = pre.reshape(1, H, W, Cout)
    _conv3x3_body(pre, w2_ref, b2_ref, out_ref, xpad_ref)


def _head_specs(H, W, Cin, Cout, with_coarse):
    in_specs = [pl.BlockSpec((1, H, W, Cin), lambda bi: (bi, 0, 0, 0))]
    if with_coarse:
        in_specs.append(
            pl.BlockSpec((1, H // 2, W // 2, Cout), lambda bi: (bi, 0, 0, 0)))
    in_specs += [
        pl.BlockSpec((Cin, Cout), lambda bi: (0, 0)),
        pl.BlockSpec((1, Cout), lambda bi: (0, 0)),
        pl.BlockSpec((9 * Cout, Cout), lambda bi: (0, 0)),
        pl.BlockSpec((1, Cout), lambda bi: (0, 0)),
    ]
    out_specs = [pl.BlockSpec((1, H, W, Cout), lambda bi: (bi, 0, 0, 0)),
                 pl.BlockSpec((1, H, W, Cout), lambda bi: (bi, 0, 0, 0))]
    return in_specs, out_specs


def fpn_top_level(c, w1, b1, w2, b2):
    """P5_conv1 + P5_conv2 fused; returns (pre_conv2_map, conv2_map)."""
    # TODO(synk): at very large resolutions tile H with 1-row halos via manual
    # DMA; at FPN pyramid-level sizes a per-image tile fits VMEM easily.
    B, H, W, Cin = c.shape
    Cout = b1.shape[0]
    in_specs, out_specs = _head_specs(H, W, Cin, Cout, with_coarse=False)
    return pl.pallas_call(
        _top_level_kernel,
        grid=(B,),
        in_specs=in_specs,
        out_specs=out_specs,
        out_shape=[jax.ShapeDtypeStruct((B, H, W, Cout), jnp.float32),
                   jax.ShapeDtypeStruct((B, H, W, Cout), jnp.float32)],
        scratch_shapes=[pltpu.VMEM((H + 2, W + 2, Cout), jnp.bfloat16)],
        compiler_params=pltpu.CompilerParams(
            dimension_semantics=("parallel",),
            vmem_limit_bytes=_VMEM_LIMIT),
    )(c, w1, b1.reshape(1, Cout), w2, b2.reshape(1, Cout))


def fpn_lateral_level(c, p_coarse_pre, w1, b1, w2, b2):
    """P?_conv1(c) + upsample2(coarse pre-map) + add, then P?_conv2, fused."""
    B, H, W, Cin = c.shape
    Bh, Hh, Wh, Cout = p_coarse_pre.shape
    assert (Bh, Hh * 2, Wh * 2) == (B, H, W)
    in_specs, out_specs = _head_specs(H, W, Cin, Cout, with_coarse=True)
    return pl.pallas_call(
        _lateral_level_kernel,
        grid=(B,),
        in_specs=in_specs,
        out_specs=out_specs,
        out_shape=[jax.ShapeDtypeStruct((B, H, W, Cout), jnp.float32),
                   jax.ShapeDtypeStruct((B, H, W, Cout), jnp.float32)],
        scratch_shapes=[pltpu.VMEM((H + 2, W + 2, Cout), jnp.bfloat16)],
        compiler_params=pltpu.CompilerParams(
            dimension_semantics=("parallel",),
            vmem_limit_bytes=_VMEM_LIMIT),
    )(c, p_coarse_pre, w1, b1.reshape(1, Cout), w2, b2.reshape(1, Cout))


# --------------------------------- FPN ---------------------------------------

def _init(key, shape, scale=0.02):
    return scale * jax.random.normal(key, shape, dtype=jnp.float32)


class FPN:
    def __init__(self, key, out_channels=128):
        ks = iter(jax.random.split(key, 40))
        nk = lambda: next(ks)
        oc = self.out_channels = out_channels
        self.ot = False  # config.TRAIN.FPN_OT_LOSS = False path
        bf16 = lambda a: a.astype(jnp.bfloat16)

        # TODO(synk): C1..C5 are external backbone modules injected into the
        # PyTorch FPN; replaced here by deterministic stand-in stages (stride-2
        # subsample + 1x1 conv) producing the channel counts the FPN laterals
        # hard-code (256 / 512 / 1024 / 2048).
        self.c1_w, self.c1_b = bf16(_init(nk(), (3, 64))), _init(nk(), (64,))
        self.c2_w, self.c2_b = bf16(_init(nk(), (64, 256))), _init(nk(), (256,))
        self.c3_w, self.c3_b = bf16(_init(nk(), (256, 512))), _init(nk(), (512,))
        self.c4_w, self.c4_b = bf16(_init(nk(), (512, 1024))), _init(nk(), (1024,))
        self.c5_w, self.c5_b = bf16(_init(nk(), (1024, 2048))), _init(nk(), (2048,))

        # FPN's own parameters (shapes from the module's __init__).  1x1 conv
        # weights stored (Cin, Cout) bf16; 3x3 weights pre-reshaped once to
        # (9*Cin, Cout) bf16 for the in-kernel im2col matmul (tap order dy,dx,c).
        r9 = lambda w: bf16(w.reshape(9 * oc, oc))
        self.p5c1_w, self.p5c1_b = bf16(_init(nk(), (2048, oc))), _init(nk(), (oc,))
        self.p4c1_w, self.p4c1_b = bf16(_init(nk(), (1024, oc))), _init(nk(), (oc,))
        self.p3c1_w, self.p3c1_b = bf16(_init(nk(), (512, oc))), _init(nk(), (oc,))
        self.p2c1_w, self.p2c1_b = bf16(_init(nk(), (256, oc))), _init(nk(), (oc,))
        self.p5c2_w, self.p5c2_b = r9(_init(nk(), (3, 3, oc, oc))), _init(nk(), (oc,))
        self.p4c2_w, self.p4c2_b = r9(_init(nk(), (3, 3, oc, oc))), _init(nk(), (oc,))
        self.p3c2_w, self.p3c2_b = r9(_init(nk(), (3, 3, oc, oc))), _init(nk(), (oc,))
        self.p2c2_w, self.p2c2_b = r9(_init(nk(), (3, 3, oc, oc))), _init(nk(), (oc,))

    def __call__(self, x_nchw, mode="test"):
        bs = x_nchw.shape[0]
        ot_loss = jnp.zeros((bs, 3), jnp.float32)

        x = jnp.transpose(x_nchw, (0, 2, 3, 1))  # NCHW -> NHWC (boundary only)

        # Stand-in backbone: C1 (/4), C2 (256ch), C3 (/8,512), C4 (/16,1024),
        # C5 (/32,2048).  Backbone maps are stored bf16: every consumer casts
        # to bf16 for the MXU, so this is bit-identical and halves HBM traffic.
        bf = jnp.bfloat16
        x = conv1x1(x[:, ::4, ::4, :], self.c1_w, self.c1_b, out_dtype=bf)
        c2 = conv1x1(x, self.c2_w, self.c2_b, out_dtype=bf)
        c3 = conv1x1(c2[:, ::2, ::2, :], self.c3_w, self.c3_b, out_dtype=bf)
        c4 = conv1x1(c3[:, ::2, ::2, :], self.c4_w, self.c4_b, out_dtype=bf)
        c5 = conv1x1(c4[:, ::2, ::2, :], self.c5_w, self.c5_b, out_dtype=bf)

        # TODO(synk): OptTrans / FPN_OT_LOSS training branch not provided in
        # the reference source; only the ot=False top-down path is implemented.
        # Each level is ONE fused kernel: conv1 (+ upsample+add) + conv2.
        p5_pre, p5 = fpn_top_level(c5, self.p5c1_w, self.p5c1_b,
                                   self.p5c2_w, self.p5c2_b)
        p4_pre, p4 = fpn_lateral_level(c4, p5_pre, self.p4c1_w, self.p4c1_b,
                                       self.p4c2_w, self.p4c2_b)
        p3_pre, p3 = fpn_lateral_level(c3, p4_pre, self.p3c1_w, self.p3c1_b,
                                       self.p3c2_w, self.p3c2_b)
        _, p2 = fpn_lateral_level(c2, p3_pre, self.p2c1_w, self.p2c1_b,
                                  self.p2c2_w, self.p2c2_b)

        # MaxPool2d(kernel_size=1, stride=2) == stride-2 subsample (glue).
        p6 = p5[:, ::2, ::2, :]

        # Boundary-only NCHW for PyTorch output parity (pyramid maps are small).
        to_nchw = lambda t: jnp.transpose(t, (0, 3, 1, 2))
        return [to_nchw(p2), to_nchw(p3), to_nchw(p4),
                to_nchw(p5), to_nchw(p6), ot_loss]


# --------------------------------- main ---------------------------------------

if __name__ == "__main__":
    key = jax.random.PRNGKey(0)
    pkey, xkey = jax.random.split(key)

    fpn = FPN(pkey, out_channels=128)
    # Small image: 64x64 -> c2 16x16, c3 8x8, c4 4x4, c5/p5 2x2, p6 1x1.
    x = jax.random.normal(xkey, (2, 3, 64, 64), dtype=jnp.float32)

    outs = jax.block_until_ready(fpn(x, mode="test"))

    p2, p3, p4, p5, p6, ot_loss = outs
    assert p2.shape == (2, 128, 16, 16)
    assert p3.shape == (2, 128, 8, 8)
    assert p4.shape == (2, 128, 4, 4)
    assert p5.shape == (2, 128, 2, 2)
    assert p6.shape == (2, 128, 1, 1)
    assert ot_loss.shape == (2, 3)
    print("KERNEL_OK")
</pallas_src>

<mosaic_0001>
module attributes {stable_mosaic.version = 11 : i64} {
  func.func @_matmul_bias_kernel(%arg0: i32, %arg1: memref<512x3xf32, #tpu.memory_space<vmem>>, %arg2: memref<3x64xbf16, #tpu.memory_space<vmem>>, %arg3: memref<1x64xf32, #tpu.memory_space<vmem>>, %arg4: memref<512x64xbf16, #tpu.memory_space<vmem>>) attributes {dimension_semantics = [#tpu.dimension_semantics<parallel>], iteration_bounds = array<i64: 1>, scalar_prefetch = 0 : i64, scratch_operands = 0 : i64, tpu.core_type = #tpu.core_type<tc>, window_params = [{transform_indices = @transform_0, window_bounds = array<i64: 512, 3>}, {pipeline_mode = #tpu.pipeline_mode<synchronous>, transform_indices = @transform_1, window_bounds = array<i64: 3, 64>}, {pipeline_mode = #tpu.pipeline_mode<synchronous>, transform_indices = @transform_2, window_bounds = array<i64: 1, 64>}, {transform_indices = @transform_3, window_bounds = array<i64: 512, 64>}]} {
    %c0 = arith.constant 0 : index
    %c0_0 = arith.constant 0 : index
    %0 = vector.load %arg1[%c0, %c0_0] : memref<512x3xf32, #tpu.memory_space<vmem>>, vector<512x3xf32>
    %1 = arith.truncf %0 : vector<512x3xf32> to vector<512x3xbf16>
    %c0_1 = arith.constant 0 : index
    %c0_2 = arith.constant 0 : index
    %2 = vector.load %arg2[%c0_1, %c0_2] : memref<3x64xbf16, #tpu.memory_space<vmem>>, vector<3x64xbf16>
    %cst = arith.constant dense<0.000000e+00> : vector<512x64xf32>
    %3 = tpu.matmul %1, %2, %cst {dimension_numbers = #tpu.dot_dimension_numbers<[1], [0], [0], [1], [0, 0, 1, 1], [], []>} : vector<512x3xbf16>, vector<3x64xbf16>, vector<512x64xf32> -> vector<512x64xf32>
    %c0_3 = arith.constant 0 : index
    %c0_4 = arith.constant 0 : index
    %4 = vector.load %arg3[%c0_3, %c0_4] : memref<1x64xf32, #tpu.memory_space<vmem>>, vector<1x64xf32>
    %5 = vector.broadcast %4 : vector<1x64xf32> to vector<512x64xf32>
    %6 = arith.addf %3, %5 : vector<512x64xf32>
    %7 = arith.truncf %6 : vector<512x64xf32> to vector<512x64xbf16>
    %c0_5 = arith.constant 0 : index
    %c0_6 = arith.constant 0 : index
    %8 = vector.load %arg4[%c0_5, %c0_6] : memref<512x64xbf16, #tpu.memory_space<vmem>>, vector<512x64xbf16>
    tpu.vector_store %arg4[%c0_5, %c0_6], %7 {strides = array<i32>} : memref<512x64xbf16, #tpu.memory_space<vmem>>, vector<512x64xbf16>,
    return
  }
  func.func @transform_0(%arg0: i32) -> (i32, i32) {
    %c0_i32 = arith.constant 0 : i32
    %c0_i32_0 = arith.constant 0 : i32
    return %arg0, %c0_i32 : i32, i32
  }
  func.func @transform_1(%arg0: i32) -> (i32, i32) {
    %c0_i32 = arith.constant 0 : i32
    %c0_i32_0 = arith.constant 0 : i32
    %c0_i32_1 = arith.constant 0 : i32
    return %c0_i32, %c0_i32_0 : i32, i32
  }
  func.func @transform_2(%arg0: i32) -> (i32, i32) {
    %c0_i32 = arith.constant 0 : i32
    %c0_i32_0 = arith.constant 0 : i32
    %c0_i32_1 = arith.constant 0 : i32
    return %c0_i32, %c0_i32_0 : i32, i32
  }
  func.func @transform_3(%arg0: i32) -> (i32, i32) {
    %c0_i32 = arith.constant 0 : i32
    %c0_i32_0 = arith.constant 0 : i32
    return %arg0, %c0_i32 : i32, i32
  }
}

</mosaic_0001>

<bundles_post_ra>
// kernel: tpu_custom_call.1
= control target key start
LH: loop header
LB: loop body
LE: loop exit
PB: predicated region body
PF: predicated region fallthrough
CT: control target
= control target key end

     0   :  { %vm213_vm0 = vcmask 1040384   ;;  %vm214_vm1 = vcmask 1041408   ;;  %v559_v1 = vmov 65535   ;;  %vm116_vm2 = vcmask 23552   ;;  %s1132_s1 = inlined_call_operand.vmem [shape: bf16[3,64], index: 1, kind: input, shape index: {}]   ;;  %s1133_s0 = inlined_call_operand.vmem [shape: f32[512,3], index: 0, kind: input, shape index: {}]   ;;  %s1134_s2 = inlined_call_operand.vmem [shape: f32[1,64], index: 2, kind: input, shape index: {}]   ;;  %s1135_s3 = inlined_call_operand.vmem [shape: bf16[512,64], index: 3, kind: output, shape index: {}]  }
   0x1   :  { %v111_v0 = vld [vmem:[%s1132_s1] sm:$0x3]  ;;  %v215_v2 = vsel %vm213_vm0, 4294967295, %v559_v1  ;;  %v16_v4 = vld [vmem:[%s1133_s0 + $0x8] sm:$0xff]  ;;  %v17_v17 = vld [vmem:[%s1133_s0 + $0x10] sm:$0xff]  ;;  %vm453_vm3 = vcmask 519168  }
   0x2   :  { %v15_v3 = vld [vmem:[%s1133_s0] sm:$0xff]  ;;  %v216_v5 = vsel %vm214_vm1, %v215_v2, 0  ;;  %v32_v7 = vld [vmem:[%s1133_s0 + $0x88] sm:$0xff]  ;;  %v18_v18 = vld [vmem:[%s1133_s0 + $0x18] sm:$0xff] }
   0x3   :  { %v31_v6 = vld [vmem:[%s1133_s0 + $0x80] sm:$0xff]  ;;  %v218_v9 = vand.u32 %v216_v5, %v111_v0  ;;  %v48_v10 = vld [vmem:[%s1133_s0 + $0x108] sm:$0xff]  ;;  %v79_v13 = vpack.c.bf16 %v16_v4, %v15_v3  ;;  %v33_v19 = vld [vmem:[%s1133_s0 + $0x90] sm:$0xff]  ;;  %v80_v25 = vpack.c.bf16 %v18_v18, %v17_v17 }
   0x4   :  { %v47_v8 = vld [vmem:[%s1133_s0 + $0x100] sm:$0xff]  ;;  %v64_v12 = vld [vmem:[%s1133_s0 + $0x188] sm:$0xff]  ;;  %v87_v14 = vpack.c.bf16 %v32_v7, %v31_v6  ;;  %v34_v20 = vld [vmem:[%s1133_s0 + $0x98] sm:$0xff] }
   0x5   :  { %v63_v11 = vld [vmem:[%s1133_s0 + $0x180] sm:$0xff]  ;;  %227 = vmatpush.bf16.msra.mxu0 %v218_v9  ;;  %554 = vmatpush.bf16.msra.mxu1 %v218_v9  ;;  %v95_v15 = vpack.c.bf16 %v48_v10, %v47_v8  ;;  %v49_v21 = vld [vmem:[%s1133_s0 + $0x110] sm:$0xff]  ;;  %v50_v22 = vld [vmem:[%s1133_s0 + $0x118] sm:$0xff]  ;;  %v88_v26 = vpack.c.bf16 %v34_v20, %v33_v19 }
   0x6   :  { %v103_v16 = vpack.c.bf16 %v64_v12, %v63_v11  ;;  %555 = vmatpush.bf16.msra.mxu2 %v218_v9  ;;  %556 = vmatpush.bf16.msra.mxu3 %v218_v9  ;;  %v65_v23 = vld [vmem:[%s1133_s0 + $0x190] sm:$0xff]  ;;  %v66_v24 = vld [vmem:[%s1133_s0 + $0x198] sm:$0xff]  ;;  %v96_v27 = vpack.c.bf16 %v50_v22, %v49_v21  ;;  %v19_v29 = vld [vmem:[%s1133_s0 + $0x20] sm:$0xff] }
   0x7   :  { %v104_v28 = vpack.c.bf16 %v66_v24, %v65_v23  ;;  %v20_v30 = vld [vmem:[%s1133_s0 + $0x28] sm:$0xff]  ;;  %v35_v31 = vld [vmem:[%s1133_s0 + $0xa0] sm:$0xff]  ;;  %v21_v41 = vld [vmem:[%s1133_s0 + $0x30] sm:$0xff] }
   0x8   :  { %522 = vmatmul.msk.bf16.vlgmr.msra.gmra.mxu0 %vm116_vm2, %v79_v13  ;;  %530 = vmatmul.msk.bf16.vlgmr.msra.gmra.mxu1 %vm116_vm2, %v87_v14  ;;  %v36_v32 = vld [vmem:[%s1133_s0 + $0xa8] sm:$0xff]  ;;  %v51_v33 = vld [vmem:[%s1133_s0 + $0x120] sm:$0xff]  ;;  %v81_v37 = vpack.c.bf16 %v20_v30, %v19_v29  ;;  %v22_v42 = vld [vmem:[%s1133_s0 + $0x38] sm:$0xff] }
   0x9   :  { %538 = vmatmul.msk.bf16.vlgmr.msra.gmra.mxu2 %vm116_vm2, %v95_v15  ;;  %546 = vmatmul.msk.bf16.vlgmr.msra.gmra.mxu3 %vm116_vm2, %v103_v16  ;;  %v52_v34 = vld [vmem:[%s1133_s0 + $0x128] sm:$0xff]  ;;  %v67_v35 = vld [vmem:[%s1133_s0 + $0x1a0] sm:$0xff]  ;;  %v89_v38 = vpack.c.bf16 %v36_v32, %v35_v31  ;;  %v37_v43 = vld [vmem:[%s1133_s0 + $0xb0] sm:$0xff]  ;;  %v82_v49 = vpack.c.bf16 %v22_v42, %v21_v41 }
   0xa   :  { %v68_v36 = vld [vmem:[%s1133_s0 + $0x1a8] sm:$0xff]  ;;  %v97_v39 = vpack.c.bf16 %v52_v34, %v51_v33  ;;  %v38_v44 = vld [vmem:[%s1133_s0 + $0xb8] sm:$0xff]  ;;  %v53_v45 = vld [vmem:[%s1133_s0 + $0x130] sm:$0xff] }
   0xb   :  { %v105_v40 = vpack.c.bf16 %v68_v36, %v67_v35  ;;  %v54_v46 = vld [vmem:[%s1133_s0 + $0x138] sm:$0xff]  ;;  %v69_v47 = vld [vmem:[%s1133_s0 + $0x1b0] sm:$0xff]  ;;  %v90_v50 = vpack.c.bf16 %v38_v44, %v37_v43  ;;  %v23_v53 = vld [vmem:[%s1133_s0 + $0x40] sm:$0xff] }
   0xc   :  { %v70_v48 = vld [vmem:[%s1133_s0 + $0x1b8] sm:$0xff]  ;;  %v98_v51 = vpack.c.bf16 %v54_v46, %v53_v45  ;;  %v24_v54 = vld [vmem:[%s1133_s0 + $0x48] sm:$0xff]  ;;  %v39_v55 = vld [vmem:[%s1133_s0 + $0xc0] sm:$0xff] }
   0xd   :  { %v106_v52 = vpack.c.bf16 %v70_v48, %v69_v47  ;;  %v40_v56 = vld [vmem:[%s1133_s0 + $0xc8] sm:$0xff]  ;;  %v55_v57 = vld [vmem:[%s1133_s0 + $0x140] sm:$0xff]  ;;  %v83_v61 = vpack.c.bf16 %v24_v54, %v23_v53  ;;  %v25_v1 = vld [vmem:[%s1133_s0 + $0x50] sm:$0xff] }
   0xe   :  { %v56_v58 = vld [vmem:[%s1133_s0 + $0x148] sm:$0xff]  ;;  %v71_v59 = vld [vmem:[%s1133_s0 + $0x1c0] sm:$0xff]  ;;  %v91_v62 = vpack.c.bf16 %v40_v56, %v39_v55  ;;  %v26_v2 = vld [vmem:[%s1133_s0 + $0x58] sm:$0xff] }
   0xf   :  { %v72_v60 = vld [vmem:[%s1133_s0 + $0x1c8] sm:$0xff]  ;;  %v99_v63 = vpack.c.bf16 %v56_v58, %v55_v57  ;;  %v41_v3 = vld [vmem:[%s1133_s0 + $0xd0] sm:$0xff]  ;;  %v42_v4 = vld [vmem:[%s1133_s0 + $0xd8] sm:$0xff]  ;;  %v84_v9 = vpack.c.bf16 %v26_v2, %v25_v1 }
  0x10   :  { %v107_v0 = vpack.c.bf16 %v72_v60, %v71_v59  ;;  %v57_v5 = vld [vmem:[%s1133_s0 + $0x150] sm:$0xff]  ;;  %v58_v6 = vld [vmem:[%s1133_s0 + $0x158] sm:$0xff]  ;;  %v92_v10 = vpack.c.bf16 %v42_v4, %v41_v3  ;;  %v27_v13 = vld [vmem:[%s1133_s0 + $0x60] sm:$0xff] }
  0x11   :  { %v73_v7 = vld [vmem:[%s1133_s0 + $0x1d0] sm:$0xff]  ;;  %v74_v8 = vld [vmem:[%s1133_s0 + $0x1d8] sm:$0xff]  ;;  %v100_v11 = vpack.c.bf16 %v58_v6, %v57_v5  ;;  %v28_v14 = vld [vmem:[%s1133_s0 + $0x68] sm:$0xff] }
  0x12   :  { %v108_v12 = vpack.c.bf16 %v74_v8, %v73_v7  ;;  %v43_v15 = vld [vmem:[%s1133_s0 + $0xe0] sm:$0xff]  ;;  %v44_v16 = vld [vmem:[%s1133_s0 + $0xe8] sm:$0xff]  ;;  %v85_v21 = vpack.c.bf16 %v28_v14, %v27_v13  ;;  %v61_v29 = vld [vmem:[%s1133_s0 + $0x170] sm:$0xff] }
  0x13   :  { %v59_v17 = vld [vmem:[%s1133_s0 + $0x160] sm:$0xff]  ;;  %v60_v18 = vld [vmem:[%s1133_s0 + $0x168] sm:$0xff]  ;;  %v93_v22 = vpack.c.bf16 %v44_v16, %v43_v15  ;;  %v62_v30 = vld [vmem:[%s1133_s0 + $0x178] sm:$0xff] }
  0x14   :  { %v75_v19 = vld [vmem:[%s1133_s0 + $0x1e0] sm:$0xff]  ;;  %v76_v20 = vld [vmem:[%s1133_s0 + $0x1e8] sm:$0xff]  ;;  %v101_v23 = vpack.c.bf16 %v60_v18, %v59_v17  ;;  %v77_v31 = vld [vmem:[%s1133_s0 + $0x1f0] sm:$0xff]  ;;  %v102_v35 = vpack.c.bf16 %v62_v30, %v61_v29 }
  0x15   :  { %v109_v24 = vpack.c.bf16 %v76_v20, %v75_v19  ;;  %v78_v32 = vld [vmem:[%s1133_s0 + $0x1f8] sm:$0xff] }
  0x16   :  { %v110_v36 = vpack.c.bf16 %v78_v32, %v77_v31 }
  0x18   :  { %523 = vmatmul.msk.bf16.gmra.mxu0 %vm116_vm2, %v80_v25  ;;  %531 = vmatmul.msk.bf16.gmra.mxu1 %vm116_vm2, %v88_v26  ;;  %v29_v25 = vld [vmem:[%s1133_s0 + $0x70] sm:$0xff]  ;;  %v30_v26 = vld [vmem:[%s1133_s0 + $0x78] sm:$0xff] }
  0x19   :  { %539 = vmatmul.msk.bf16.gmra.mxu2 %vm116_vm2, %v96_v27  ;;  %547 = vmatmul.msk.bf16.gmra.mxu3 %vm116_vm2, %v104_v28  ;;  %v45_v27 = vld [vmem:[%s1133_s0 + $0xf0] sm:$0xff]  ;;  %v46_v28 = vld [vmem:[%s1133_s0 + $0xf8] sm:$0xff]  ;;  %v86_v33 = vpack.c.bf16 %v30_v26, %v29_v25 }
  0x1a   :  { %v94_v34 = vpack.c.bf16 %v46_v28, %v45_v27 }
  0x28   :  { %524 = vmatmul.msk.bf16.gmra.mxu0 %vm116_vm2, %v81_v37  ;;  %532 = vmatmul.msk.bf16.gmra.mxu1 %vm116_vm2, %v89_v38  ;;  %v810_v37 = vld [vmem:[%s1134_s2] ss:$0 sm:$0xff] }
  0x29   :  { %540 = vmatmul.msk.bf16.gmra.mxu2 %vm116_vm2, %v97_v39  ;;  %548 = vmatmul.msk.bf16.gmra.mxu3 %vm116_vm2, %v105_v40 }
  0x38   :  { %525 = vmatmul.msk.bf16.gmra.mxu0 %vm116_vm2, %v82_v49  ;;  %533 = vmatmul.msk.bf16.gmra.mxu1 %vm116_vm2, %v90_v50 }
  0x39   :  { %541 = vmatmul.msk.bf16.gmra.mxu2 %vm116_vm2, %v98_v51  ;;  %549 = vmatmul.msk.bf16.gmra.mxu3 %vm116_vm2, %v106_v52 }
  0x48   :  { %526 = vmatmul.msk.bf16.gmra.mxu0 %vm116_vm2, %v83_v61  ;;  %534 = vmatmul.msk.bf16.gmra.mxu1 %vm116_vm2, %v91_v62 }
  0x49   :  { %542 = vmatmul.msk.bf16.gmra.mxu2 %vm116_vm2, %v99_v63  ;;  %550 = vmatmul.msk.bf16.gmra.mxu3 %vm116_vm2, %v107_v0 }
  0x58   :  { %527 = vmatmul.msk.bf16.gmra.mxu0 %vm116_vm2, %v84_v9  ;;  %535 = vmatmul.msk.bf16.gmra.mxu1 %vm116_vm2, %v92_v10 }
  0x59   :  { %543 = vmatmul.msk.bf16.gmra.mxu2 %vm116_vm2, %v100_v11  ;;  %551 = vmatmul.msk.bf16.gmra.mxu3 %vm116_vm2, %v108_v12 }
  0x68   :  { %528 = vmatmul.msk.bf16.gmra.mxu0 %vm116_vm2, %v85_v21  ;;  %536 = vmatmul.msk.bf16.gmra.mxu1 %vm116_vm2, %v93_v22 }
  0x69   :  { %544 = vmatmul.msk.bf16.gmra.mxu2 %vm116_vm2, %v101_v23  ;;  %552 = vmatmul.msk.bf16.gmra.mxu3 %vm116_vm2, %v109_v24 }
  0x78   :  { %529 = vmatmul.msk.bf16.gmra.mxu0 %vm116_vm2, %v86_v33  ;;  %537 = vmatmul.msk.bf16.gmra.mxu1 %vm116_vm2, %v94_v34 }
  0x79   :  { %545 = vmatmul.msk.bf16.gmra.mxu2 %vm116_vm2, %v102_v35  ;;  %553 = vmatmul.msk.bf16.gmra.mxu3 %vm116_vm2, %v110_v36 }
  0x85   :  { %v229_v38 = vpop.f32.mrf.mxu0  ;;  %v269_v39 = vpop.f32.mrf.mxu1 }
  0x86   :  { %v230_v40 = vadd.f32 %v810_v37, %v229_v38  ;;  %v270_v41 = vadd.f32 %v810_v37, %v269_v39 }
  0x88   :  { %v389_v42 = vpack.c.bf16 %v230_v40, %v230_v40  ;;  %v405_v43 = vpack.c.bf16 %v270_v41, %v270_v41 }
  0x8a   :  { %454 = vst.msk [vmem:[%s1135_s3] sm:$0xf] %vm453_vm3, %v389_v42 }
  0x8b   :  { %470 = vst.msk [vmem:[%s1135_s3 + $0x40] sm:$0xf] %vm453_vm3, %v405_v43 }
  0x8c   :  { %v309_v44 = vpop.f32.mrf.mxu2  ;;  %v349_v45 = vpop.f32.mrf.mxu3 }
  0x8d   :  { %v310_v46 = vadd.f32 %v810_v37, %v309_v44  ;;  %v350_v47 = vadd.f32 %v810_v37, %v349_v45  ;;  %v231_v48 = vpop.f32.mrf.mxu0  ;;  %v271_v49 = vpop.f32.mrf.mxu1 }
  0x8e   :  { %v232_v50 = vadd.f32 %v810_v37, %v231_v48  ;;  %v272_v51 = vadd.f32 %v810_v37, %v271_v49 }
  0x8f   :  { %v421_v52 = vpack.c.bf16 %v310_v46, %v310_v46  ;;  %v437_v53 = vpack.c.bf16 %v350_v47, %v350_v47 }
  0x90   :  { %v390_v54 = vpack.c.bf16 %v232_v50, %v232_v50  ;;  %v406_v55 = vpack.c.bf16 %v272_v51, %v272_v51 }
  0x91   :  { %486 = vst.msk [vmem:[%s1135_s3 + $0x80] sm:$0xf] %vm453_vm3, %v421_v52 }
  0x92   :  { %502 = vst.msk [vmem:[%s1135_s3 + $0xc0] sm:$0xf] %vm453_vm3, %v437_v53 }
  0x93   :  { %455 = vst.msk [vmem:[%s1135_s3 + $0x4] sm:$0xf] %vm453_vm3, %v390_v54 }
  0x94   :  { %471 = vst.msk [vmem:[%s1135_s3 + $0x44] sm:$0xf] %vm453_vm3, %v406_v55  ;;  %v311_v56 = vpop.f32.mrf.mxu2  ;;  %v351_v57 = vpop.f32.mrf.mxu3 }
  0x95   :  { %v312_v58 = vadd.f32 %v810_v37, %v311_v56  ;;  %v352_v59 = vadd.f32 %v810_v37, %v351_v57  ;;  %v234_v60 = vpop.f32.mrf.mxu0  ;;  %v274_v61 = vpop.f32.mrf.mxu1 }
  0x96   :  { %v235_v62 = vadd.f32 %v810_v37, %v234_v60  ;;  %v275_v63 = vadd.f32 %v810_v37, %v274_v61 }
  0x97   :  { %v422_v0 = vpack.c.bf16 %v312_v58, %v312_v58  ;;  %v438_v1 = vpack.c.bf16 %v352_v59, %v352_v59 }
  0x98   :  { %v391_v2 = vpack.c.bf16 %v235_v62, %v235_v62  ;;  %v407_v3 = vpack.c.bf16 %v275_v63, %v275_v63 }
  0x99   :  { %487 = vst.msk [vmem:[%s1135_s3 + $0x84] sm:$0xf] %vm453_vm3, %v422_v0 }
  0x9a   :  { %503 = vst.msk [vmem:[%s1135_s3 + $0xc4] sm:$0xf] %vm453_vm3, %v438_v1 }
  0x9b   :  { %456 = vst.msk [vmem:[%s1135_s3 + $0x8] sm:$0xf] %vm453_vm3, %v391_v2 }
  0x9c   :  { %472 = vst.msk [vmem:[%s1135_s3 + $0x48] sm:$0xf] %vm453_vm3, %v407_v3  ;;  %v314_v4 = vpop.f32.mrf.mxu2  ;;  %v354_v5 = vpop.f32.mrf.mxu3 }
  0x9d   :  { %v315_v6 = vadd.f32 %v810_v37, %v314_v4  ;;  %v355_v7 = vadd.f32 %v810_v37, %v354_v5  ;;  %v236_v8 = vpop.f32.mrf.mxu0  ;;  %v276_v9 = vpop.f32.mrf.mxu1 }
  0x9e   :  { %v237_v10 = vadd.f32 %v810_v37, %v236_v8  ;;  %v277_v11 = vadd.f32 %v810_v37, %v276_v9 }
  0x9f   :  { %v423_v12 = vpack.c.bf16 %v315_v6, %v315_v6  ;;  %v439_v13 = vpack.c.bf16 %v355_v7, %v355_v7 }
  0xa0   :  { %v392_v14 = vpack.c.bf16 %v237_v10, %v237_v10  ;;  %v408_v15 = vpack.c.bf16 %v277_v11, %v277_v11 }
  0xa1   :  { %488 = vst.msk [vmem:[%s1135_s3 + $0x88] sm:$0xf] %vm453_vm3, %v423_v12 }
  0xa2   :  { %504 = vst.msk [vmem:[%s1135_s3 + $0xc8] sm:$0xf] %vm453_vm3, %v439_v13 }
  0xa3   :  { %457 = vst.msk [vmem:[%s1135_s3 + $0xc] sm:$0xf] %vm453_vm3, %v392_v14 }
  0xa4   :  { %473 = vst.msk [vmem:[%s1135_s3 + $0x4c] sm:$0xf] %vm453_vm3, %v408_v15  ;;  %v316_v16 = vpop.f32.mrf.mxu2  ;;  %v356_v17 = vpop.f32.mrf.mxu3 }
  0xa5   :  { %v317_v18 = vadd.f32 %v810_v37, %v316_v16  ;;  %v357_v19 = vadd.f32 %v810_v37, %v356_v17  ;;  %v239_v20 = vpop.f32.mrf.mxu0  ;;  %v279_v21 = vpop.f32.mrf.mxu1 }
  0xa6   :  { %v240_v22 = vadd.f32 %v810_v37, %v239_v20  ;;  %v280_v23 = vadd.f32 %v810_v37, %v279_v21 }
  0xa7   :  { %v424_v24 = vpack.c.bf16 %v317_v18, %v317_v18  ;;  %v440_v25 = vpack.c.bf16 %v357_v19, %v357_v19 }
  0xa8   :  { %v393_v26 = vpack.c.bf16 %v240_v22, %v240_v22  ;;  %v409_v27 = vpack.c.bf16 %v280_v23, %v280_v23 }
  0xa9   :  { %489 = vst.msk [vmem:[%s1135_s3 + $0x8c] sm:$0xf] %vm453_vm3, %v424_v24 }
  0xaa   :  { %505 = vst.msk [vmem:[%s1135_s3 + $0xcc] sm:$0xf] %vm453_vm3, %v440_v25 }
  0xab   :  { %458 = vst.msk [vmem:[%s1135_s3 + $0x10] sm:$0xf] %vm453_vm3, %v393_v26 }
  0xac   :  { %474 = vst.msk [vmem:[%s1135_s3 + $0x50] sm:$0xf] %vm453_vm3, %v409_v27  ;;  %v319_v28 = vpop.f32.mrf.mxu2  ;;  %v359_v29 = vpop.f32.mrf.mxu3 }
  0xad   :  { %v320_v30 = vadd.f32 %v810_v37, %v319_v28  ;;  %v360_v31 = vadd.f32 %v810_v37, %v359_v29  ;;  %v241_v32 = vpop.f32.mrf.mxu0  ;;  %v281_v33 = vpop.f32.mrf.mxu1 }
  0xae   :  { %v242_v34 = vadd.f32 %v810_v37, %v241_v32  ;;  %v282_v35 = vadd.f32 %v810_v37, %v281_v33 }
  0xaf   :  { %v425_v36 = vpack.c.bf16 %v320_v30, %v320_v30  ;;  %v441_v38 = vpack.c.bf16 %v360_v31, %v360_v31 }
  0xb0   :  { %v394_v39 = vpack.c.bf16 %v242_v34, %v242_v34  ;;  %v410_v40 = vpack.c.bf16 %v282_v35, %v282_v35 }
  0xb1   :  { %490 = vst.msk [vmem:[%s1135_s3 + $0x90] sm:$0xf] %vm453_vm3, %v425_v36 }
  0xb2   :  { %506 = vst.msk [vmem:[%s1135_s3 + $0xd0] sm:$0xf] %vm453_vm3, %v441_v38 }
  0xb3   :  { %459 = vst.msk [vmem:[%s1135_s3 + $0x14] sm:$0xf] %vm453_vm3, %v394_v39 }
  0xb4   :  { %475 = vst.msk [vmem:[%s1135_s3 + $0x54] sm:$0xf] %vm453_vm3, %v410_v40  ;;  %v321_v41 = vpop.f32.mrf.mxu2  ;;  %v361_v42 = vpop.f32.mrf.mxu3 }
  0xb5   :  { %v322_v43 = vadd.f32 %v810_v37, %v321_v41  ;;  %v362_v44 = vadd.f32 %v810_v37, %v361_v42  ;;  %v244_v45 = vpop.f32.mrf.mxu0  ;;  %v284_v46 = vpop.f32.mrf.mxu1 }
  0xb6   :  { %v245_v47 = vadd.f32 %v810_v37, %v244_v45  ;;  %v285_v48 = vadd.f32 %v810_v37, %v284_v46 }
  0xb7   :  { %v426_v49 = vpack.c.bf16 %v322_v43, %v322_v43  ;;  %v442_v50 = vpack.c.bf16 %v362_v44, %v362_v44 }
  0xb8   :  { %v395_v51 = vpack.c.bf16 %v245_v47, %v245_v47  ;;  %v411_v52 = vpack.c.bf16 %v285_v48, %v285_v48 }
  0xb9   :  { %491 = vst.msk [vmem:[%s1135_s3 + $0x94] sm:$0xf] %vm453_vm3, %v426_v49 }
  0xba   :  { %507 = vst.msk [vmem:[%s1135_s3 + $0xd4] sm:$0xf] %vm453_vm3, %v442_v50 }
  0xbb   :  { %460 = vst.msk [vmem:[%s1135_s3 + $0x18] sm:$0xf] %vm453_vm3, %v395_v51 }
  0xbc   :  { %476 = vst.msk [vmem:[%s1135_s3 + $0x58] sm:$0xf] %vm453_vm3, %v411_v52  ;;  %v324_v53 = vpop.f32.mrf.mxu2  ;;  %v364_v54 = vpop.f32.mrf.mxu3 }
  0xbd   :  { %v325_v55 = vadd.f32 %v810_v37, %v324_v53  ;;  %v365_v56 = vadd.f32 %v810_v37, %v364_v54  ;;  %v246_v57 = vpop.f32.mrf.mxu0  ;;  %v286_v58 = vpop.f32.mrf.mxu1 }
  0xbe   :  { %v247_v59 = vadd.f32 %v810_v37, %v246_v57  ;;  %v287_v60 = vadd.f32 %v810_v37, %v286_v58 }
  0xbf   :  { %v427_v61 = vpack.c.bf16 %v325_v55, %v325_v55  ;;  %v443_v62 = vpack.c.bf16 %v365_v56, %v365_v56 }
  0xc0   :  { %v396_v63 = vpack.c.bf16 %v247_v59, %v247_v59  ;;  %v412_v0 = vpack.c.bf16 %v287_v60, %v287_v60 }
  0xc1   :  { %492 = vst.msk [vmem:[%s1135_s3 + $0x98] sm:$0xf] %vm453_vm3, %v427_v61 }
  0xc2   :  { %508 = vst.msk [vmem:[%s1135_s3 + $0xd8] sm:$0xf] %vm453_vm3, %v443_v62 }
  0xc3   :  { %461 = vst.msk [vmem:[%s1135_s3 + $0x1c] sm:$0xf] %vm453_vm3, %v396_v63 }
  0xc4   :  { %477 = vst.msk [vmem:[%s1135_s3 + $0x5c] sm:$0xf] %vm453_vm3, %v412_v0  ;;  %v326_v1 = vpop.f32.mrf.mxu2  ;;  %v366_v2 = vpop.f32.mrf.mxu3 }
  0xc5   :  { %v327_v3 = vadd.f32 %v810_v37, %v326_v1  ;;  %v367_v4 = vadd.f32 %v810_v37, %v366_v2  ;;  %v249_v5 = vpop.f32.mrf.mxu0  ;;  %v289_v6 = vpop.f32.mrf.mxu1 }
  0xc6   :  { %v250_v7 = vadd.f32 %v810_v37, %v249_v5  ;;  %v290_v8 = vadd.f32 %v810_v37, %v289_v6 }
  0xc7   :  { %v428_v9 = vpack.c.bf16 %v327_v3, %v327_v3  ;;  %v444_v10 = vpack.c.bf16 %v367_v4, %v367_v4 }
  0xc8   :  { %v397_v11 = vpack.c.bf16 %v250_v7, %v250_v7  ;;  %v413_v12 = vpack.c.bf16 %v290_v8, %v290_v8 }
  0xc9   :  { %493 = vst.msk [vmem:[%s1135_s3 + $0x9c] sm:$0xf] %vm453_vm3, %v428_v9 }
  0xca   :  { %509 = vst.msk [vmem:[%s1135_s3 + $0xdc] sm:$0xf] %vm453_vm3, %v444_v10 }
  0xcb   :  { %462 = vst.msk [vmem:[%s1135_s3 + $0x20] sm:$0xf] %vm453_vm3, %v397_v11 }
  0xcc   :  { %478 = vst.msk [vmem:[%s1135_s3 + $0x60] sm:$0xf] %vm453_vm3, %v413_v12  ;;  %v329_v13 = vpop.f32.mrf.mxu2  ;;  %v369_v14 = vpop.f32.mrf.mxu3 }
  0xcd   :  { %v330_v15 = vadd.f32 %v810_v37, %v329_v13  ;;  %v370_v16 = vadd.f32 %v810_v37, %v369_v14  ;;  %v251_v17 = vpop.f32.mrf.mxu0  ;;  %v291_v18 = vpop.f32.mrf.mxu1 }
  0xce   :  { %v252_v19 = vadd.f32 %v810_v37, %v251_v17  ;;  %v292_v20 = vadd.f32 %v810_v37, %v291_v18 }
  0xcf   :  { %v429_v21 = vpack.c.bf16 %v330_v15, %v330_v15  ;;  %v445_v22 = vpack.c.bf16 %v370_v16, %v370_v16 }
  0xd0   :  { %v398_v23 = vpack.c.bf16 %v252_v19, %v252_v19  ;;  %v414_v24 = vpack.c.bf16 %v292_v20, %v292_v20 }
  0xd1   :  { %494 = vst.msk [vmem:[%s1135_s3 + $0xa0] sm:$0xf] %vm453_vm3, %v429_v21 }
  0xd2   :  { %510 = vst.msk [vmem:[%s1135_s3 + $0xe0] sm:$0xf] %vm453_vm3, %v445_v22 }
  0xd3   :  { %463 = vst.msk [vmem:[%s1135_s3 + $0x24] sm:$0xf] %vm453_vm3, %v398_v23 }
  0xd4   :  { %479 = vst.msk [vmem:[%s1135_s3 + $0x64] sm:$0xf] %vm453_vm3, %v414_v24  ;;  %v331_v25 = vpop.f32.mrf.mxu2  ;;  %v371_v26 = vpop.f32.mrf.mxu3 }
  0xd5   :  { %v332_v27 = vadd.f32 %v810_v37, %v331_v25  ;;  %v372_v28 = vadd.f32 %v810_v37, %v371_v26  ;;  %v254_v29 = vpop.f32.mrf.mxu0  ;;  %v294_v30 = vpop.f32.mrf.mxu1 }
  0xd6   :  { %v255_v31 = vadd.f32 %v810_v37, %v254_v29  ;;  %v295_v32 = vadd.f32 %v810_v37, %v294_v30 }
  0xd7   :  { %v430_v33 = vpack.c.bf16 %v332_v27, %v332_v27  ;;  %v446_v34 = vpack.c.bf16 %v372_v28, %v372_v28 }
  0xd8   :  { %v399_v35 = vpack.c.bf16 %v255_v31, %v255_v31  ;;  %v415_v36 = vpack.c.bf16 %v295_v32, %v295_v32 }
  0xd9   :  { %495 = vst.msk [vmem:[%s1135_s3 + $0xa4] sm:$0xf] %vm453_vm3, %v430_v33 }
  0xda   :  { %511 = vst.msk [vmem:[%s1135_s3 + $0xe4] sm:$0xf] %vm453_vm3, %v446_v34 }
  0xdb   :  { %464 = vst.msk [vmem:[%s1135_s3 + $0x28] sm:$0xf] %vm453_vm3, %v399_v35 }
  0xdc   :  { %480 = vst.msk [vmem:[%s1135_s3 + $0x68] sm:$0xf] %vm453_vm3, %v415_v36  ;;  %v334_v38 = vpop.f32.mrf.mxu2  ;;  %v374_v39 = vpop.f32.mrf.mxu3 }
  0xdd   :  { %v335_v40 = vadd.f32 %v810_v37, %v334_v38  ;;  %v375_v41 = vadd.f32 %v810_v37, %v374_v39  ;;  %v256_v42 = vpop.f32.mrf.mxu0  ;;  %v296_v43 = vpop.f32.mrf.mxu1 }
  0xde   :  { %v257_v44 = vadd.f32 %v810_v37, %v256_v42  ;;  %v297_v45 = vadd.f32 %v810_v37, %v296_v43 }
  0xdf   :  { %v431_v46 = vpack.c.bf16 %v335_v40, %v335_v40  ;;  %v447_v47 = vpack.c.bf16 %v375_v41, %v375_v41 }
  0xe0   :  { %v400_v48 = vpack.c.bf16 %v257_v44, %v257_v44  ;;  %v416_v49 = vpack.c.bf16 %v297_v45, %v297_v45 }
  0xe1   :  { %496 = vst.msk [vmem:[%s1135_s3 + $0xa8] sm:$0xf] %vm453_vm3, %v431_v46 }
  0xe2   :  { %512 = vst.msk [vmem:[%s1135_s3 + $0xe8] sm:$0xf] %vm453_vm3, %v447_v47 }
  0xe3   :  { %465 = vst.msk [vmem:[%s1135_s3 + $0x2c] sm:$0xf] %vm453_vm3, %v400_v48 }
  0xe4   :  { %481 = vst.msk [vmem:[%s1135_s3 + $0x6c] sm:$0xf] %vm453_vm3, %v416_v49  ;;  %v336_v50 = vpop.f32.mrf.mxu2  ;;  %v376_v51 = vpop.f32.mrf.mxu3 }
  0xe5   :  { %v337_v52 = vadd.f32 %v810_v37, %v336_v50  ;;  %v377_v53 = vadd.f32 %v810_v37, %v376_v51  ;;  %v259_v54 = vpop.f32.mrf.mxu0  ;;  %v299_v55 = vpop.f32.mrf.mxu1 }
  0xe6   :  { %v260_v56 = vadd.f32 %v810_v37, %v259_v54  ;;  %v300_v57 = vadd.f32 %v810_v37, %v299_v55 }
  0xe7   :  { %v432_v58 = vpack.c.bf16 %v337_v52, %v337_v52  ;;  %v448_v59 = vpack.c.bf16 %v377_v53, %v377_v53 }
  0xe8   :  { %v401_v60 = vpack.c.bf16 %v260_v56, %v260_v56  ;;  %v417_v61 = vpack.c.bf16 %v300_v57, %v300_v57 }
  0xe9   :  { %497 = vst.msk [vmem:[%s1135_s3 + $0xac] sm:$0xf] %vm453_vm3, %v432_v58 }
  0xea   :  { %513 = vst.msk [vmem:[%s1135_s3 + $0xec] sm:$0xf] %vm453_vm3, %v448_v59 }
  0xeb   :  { %466 = vst.msk [vmem:[%s1135_s3 + $0x30] sm:$0xf] %vm453_vm3, %v401_v60 }
  0xec   :  { %482 = vst.msk [vmem:[%s1135_s3 + $0x70] sm:$0xf] %vm453_vm3, %v417_v61  ;;  %v339_v62 = vpop.f32.mrf.mxu2  ;;  %v379_v63 = vpop.f32.mrf.mxu3 }
  0xed   :  { %v340_v0 = vadd.f32 %v810_v37, %v339_v62  ;;  %v380_v1 = vadd.f32 %v810_v37, %v379_v63  ;;  %v261_v2 = vpop.f32.mrf.mxu0  ;;  %v301_v3 = vpop.f32.mrf.mxu1 }
  0xee   :  { %v262_v4 = vadd.f32 %v810_v37, %v261_v2  ;;  %v302_v5 = vadd.f32 %v810_v37, %v301_v3 }
  0xef   :  { %v433_v6 = vpack.c.bf16 %v340_v0, %v340_v0  ;;  %v449_v7 = vpack.c.bf16 %v380_v1, %v380_v1 }
  0xf0   :  { %v402_v8 = vpack.c.bf16 %v262_v4, %v262_v4  ;;  %v418_v9 = vpack.c.bf16 %v302_v5, %v302_v5 }
  0xf1   :  { %498 = vst.msk [vmem:[%s1135_s3 + $0xb0] sm:$0xf] %vm453_vm3, %v433_v6 }
  0xf2   :  { %514 = vst.msk [vmem:[%s1135_s3 + $0xf0] sm:$0xf] %vm453_vm3, %v449_v7 }
  0xf3   :  { %467 = vst.msk [vmem:[%s1135_s3 + $0x34] sm:$0xf] %vm453_vm3, %v402_v8 }
  0xf4   :  { %483 = vst.msk [vmem:[%s1135_s3 + $0x74] sm:$0xf] %vm453_vm3, %v418_v9  ;;  %v341_v10 = vpop.f32.mrf.mxu2  ;;  %v381_v11 = vpop.f32.mrf.mxu3 }
  0xf5   :  { %v342_v12 = vadd.f32 %v810_v37, %v341_v10  ;;  %v382_v13 = vadd.f32 %v810_v37, %v381_v11  ;;  %v264_v14 = vpop.f32.mrf.mxu0  ;;  %v304_v15 = vpop.f32.mrf.mxu1 }
  0xf6   :  { %v265_v16 = vadd.f32 %v810_v37, %v264_v14  ;;  %v305_v17 = vadd.f32 %v810_v37, %v304_v15 }
  0xf7   :  { %v434_v18 = vpack.c.bf16 %v342_v12, %v342_v12  ;;  %v450_v19 = vpack.c.bf16 %v382_v13, %v382_v13 }
  0xf8   :  { %v403_v20 = vpack.c.bf16 %v265_v16, %v265_v16  ;;  %v419_v21 = vpack.c.bf16 %v305_v17, %v305_v17 }
  0xf9   :  { %499 = vst.msk [vmem:[%s1135_s3 + $0xb4] sm:$0xf] %vm453_vm3, %v434_v18 }
  0xfa   :  { %515 = vst.msk [vmem:[%s1135_s3 + $0xf4] sm:$0xf] %vm453_vm3, %v450_v19 }
  0xfb   :  { %468 = vst.msk [vmem:[%s1135_s3 + $0x38] sm:$0xf] %vm453_vm3, %v403_v20 }
  0xfc   :  { %484 = vst.msk [vmem:[%s1135_s3 + $0x78] sm:$0xf] %vm453_vm3, %v419_v21  ;;  %v344_v22 = vpop.f32.mrf.mxu2  ;;  %v384_v23 = vpop.f32.mrf.mxu3 }
  0xfd   :  { %v345_v24 = vadd.f32 %v810_v37, %v344_v22  ;;  %v385_v25 = vadd.f32 %v810_v37, %v384_v23  ;;  %v266_v26 = vpop.f32.mrf.mxu0  ;;  %v306_v27 = vpop.f32.mrf.mxu1 }
  0xfe   :  { %v267_v28 = vadd.f32 %v810_v37, %v266_v26  ;;  %v307_v29 = vadd.f32 %v810_v37, %v306_v27 }
  0xff   :  { %v435_v30 = vpack.c.bf16 %v345_v24, %v345_v24  ;;  %v451_v31 = vpack.c.bf16 %v385_v25, %v385_v25 }
 0x100   :  { %v404_v32 = vpack.c.bf16 %v267_v28, %v267_v28  ;;  %v420_v33 = vpack.c.bf16 %v307_v29, %v307_v29 }
 0x101   :  { %500 = vst.msk [vmem:[%s1135_s3 + $0xb8] sm:$0xf] %vm453_vm3, %v435_v30 }
 0x102   :  { %516 = vst.msk [vmem:[%s1135_s3 + $0xf8] sm:$0xf] %vm453_vm3, %v451_v31 }
 0x103   :  { %469 = vst.msk [vmem:[%s1135_s3 + $0x3c] sm:$0xf] %vm453_vm3, %v404_v32 }
 0x104   :  { %485 = vst.msk [vmem:[%s1135_s3 + $0x7c] sm:$0xf] %vm453_vm3, %v420_v33  ;;  %v346_v34 = vpop.f32.mrf.mxu2  ;;  %v386_v35 = vpop.f32.mrf.mxu3 }
 0x105   :  { %v347_v36 = vadd.f32 %v810_v37, %v346_v34  ;;  %v387_v38 = vadd.f32 %v810_v37, %v386_v35 }
 0x107   :  { %v436_v39 = vpack.c.bf16 %v347_v36, %v347_v36  ;;  %v452_v40 = vpack.c.bf16 %v387_v38, %v387_v38 }
 0x109   :  { %501 = vst.msk [vmem:[%s1135_s3 + $0xbc] sm:$0xf] %vm453_vm3, %v436_v39 }
 0x10a   :  { %517 = vst.msk [vmem:[%s1135_s3 + $0xfc] sm:$0xf] %vm453_vm3, %v452_v40 }

</bundles_post_ra>
